<compile_context>
chip_gen: v5e
topology: v5e:2x2
jax: 0.10.0
libtpu: 0.0.40
codegen_flags: <defaults>
</compile_context>

<pallas_src>
import functools
import math

import jax
import jax.numpy as jnp
import numpy as np
from jax import lax
from jax.experimental import pallas as pl
from jax.experimental.pallas import tpu as pltpu


# ----------------------------------------------------------------------------
# Tiling / VMEM helpers
# ----------------------------------------------------------------------------
def _pick_tile(dim, target, align):
    """Largest tile <= target that divides dim and is a multiple of `align`;
    falls back to the full dim (always a legal block)."""
    if dim <= target:
        return dim
    t = (target // align) * align
    while t >= align:
        if dim % t == 0:
            return t
        t -= align
    return dim


def _pick_div(n, target):
    """Largest divisor of n that is <= target (>= 1)."""
    t = max(1, min(n, target))
    while n % t:
        t -= 1
    return t


def _vmem_limit(block_bytes, scratch_bytes):
    """Scoped-VMEM request: double-buffered blocks + scratch + headroom, capped
    at 3/4 of physical VMEM (v7x has only 64 MiB; v5e/v6e have 128 MiB)."""
    try:
        cap = pltpu.get_tpu_info().vmem_capacity_bytes
    except Exception:
        cap = 64 * 1024 * 1024
    need = 2 * block_bytes + scratch_bytes + (4 << 20)
    return int(min(max(need, 32 << 20), cap * 3 // 4))


# ----------------------------------------------------------------------------
# Kernel 1: projection fused with the head split.
#   x:(B, S, Din) @ W^T, W laid out per-head as (Hout, d_k, Din)
#   -> out:(B, Hout, S, d_k).
# grid = (B, S/tm, Hout/hg, Din/tk); the Din axis is the reduction (innermost).
# Re-read factors: x is re-read once per head group, weights once per row tile;
# tm_target / head_lane_target are kept large and balanced to bound both.
# ----------------------------------------------------------------------------
def _proj_heads_kernel(x_ref, w_ref, o_ref, acc_ref, *, hg):
    kk = pl.program_id(3)

    @pl.when(kk == 0)
    def _():
        acc_ref[...] = jnp.zeros_like(acc_ref)

    x = x_ref[0]                                    # (tm, tk)
    for g in range(hg):                             # static unrolled loop
        acc_ref[g] += lax.dot_general(
            x, w_ref[g],                            # (tm, tk) x (d_k, tk)
            dimension_numbers=(((1,), (1,)), ((), ())),   # NT contraction
            preferred_element_type=jnp.float32,
        )

    @pl.when(kk == pl.num_programs(3) - 1)
    def _():
        o_ref[0] = acc_ref[...].astype(o_ref.dtype)


def project_to_heads(x, w_heads, *, tm_target=512, tk_target=1024,
                     head_lane_target=512):
    B, S, Din = x.shape
    Hout, d_k, Din2 = w_heads.shape
    assert Din == Din2
    tm = _pick_tile(S, tm_target, 8)
    tk = _pick_tile(Din, tk_target, 128)
    hg = _pick_div(Hout, max(1, head_lane_target // d_k))
    grid = (B, S // tm, Hout // hg, Din // tk)

    itm = x.dtype.itemsize
    block_bytes = (tm * tk + hg * d_k * tk + hg * tm * d_k) * itm
    scratch_bytes = hg * tm * d_k * 4

    return pl.pallas_call(
        functools.partial(_proj_heads_kernel, hg=hg),
        out_shape=jax.ShapeDtypeStruct((B, Hout, S, d_k), x.dtype),
        grid=grid,
        in_specs=[
            pl.BlockSpec((1, tm, tk), lambda b, i, g, kk: (b, i, kk)),
            pl.BlockSpec((hg, d_k, tk), lambda b, i, g, kk: (g, 0, kk)),
        ],
        out_specs=pl.BlockSpec((1, hg, tm, d_k),
                               lambda b, i, g, kk: (b, g, i, 0)),
        scratch_shapes=[pltpu.VMEM((hg, tm, d_k), jnp.float32)],
        compiler_params=pltpu.CompilerParams(
            dimension_semantics=("parallel", "parallel", "parallel",
                                 "arbitrary"),
            vmem_limit_bytes=_vmem_limit(block_bytes, scratch_bytes),
        ),
    )(x, w_heads)


# ----------------------------------------------------------------------------
# Kernel 2: flash-style scaled-dot-product attention over head-major inputs.
#   q/k/v sources are (B, Hsrc, S, d_k); head slots [off, off + num_heads)
#   of each source are used, so a fused QKV / fused KV projection output can
#   be consumed directly (no HBM slicing).
# Generation notes: v6e/v7x -> tq=256 fills the 256-wide MXU; on v7x (64 MiB
# VMEM) prefer tkv_target=256 and/or head_block < num_heads; on v5e keep
# tq_target=128 and spend VMEM on a larger tkv instead.
# ----------------------------------------------------------------------------
def _flash_attn_kernel(*refs, mask_mode):
    if mask_mode == "dense":
        q_ref, k_ref, v_ref, bias_ref, o_ref, m_sc, l_sc, acc_sc = refs
    else:
        q_ref, k_ref, v_ref, o_ref, m_sc, l_sc, acc_sc = refs
        bias_ref = None
    qi = pl.program_id(2)
    kvi = pl.program_id(3)
    tq = q_ref.shape[2]
    tkv = k_ref.shape[2]

    @pl.when(kvi == 0)
    def _():
        m_sc[...] = jnp.full_like(m_sc, -jnp.inf)
        l_sc[...] = jnp.zeros_like(l_sc)
        acc_sc[...] = jnp.zeros_like(acc_sc)

    def update():
        q = q_ref[0]                                # (hb, tq, d_k); 1/sqrt(d_k) already in w_q
        k = k_ref[0]                                # (hb, tkv, d_k)
        v = v_ref[0]                                # (hb, tkv, d_k)
        # s[h, q, kv] = sum_d q[h, q, d] * k[h, kv, d]  (NT, head-batched)
        s = lax.dot_general(
            q, k, dimension_numbers=(((2,), (2,)), ((0,), (0,))),
            preferred_element_type=jnp.float32)     # (hb, tq, tkv) f32
        if mask_mode == "dense":
            s = s + bias_ref[...][None, :, :]
        elif mask_mode == "causal":
            rows = qi * tq + lax.broadcasted_iota(jnp.int32, (tq, tkv), 0)
            cols = kvi * tkv + lax.broadcasted_iota(jnp.int32, (tq, tkv), 1)
            s = jnp.where((rows >= cols)[None, :, :], s, jnp.float32(-1e30))

        m_prev = m_sc[...]                          # (hb, tq, 128) lane-replicated
        m_new = jnp.maximum(m_prev, jnp.max(s, axis=-1, keepdims=True))
        alpha = jnp.exp(m_prev - m_new)
        p = jnp.exp(s - m_new[..., :1])             # (hb, tq, tkv)
        l_sc[...] = alpha * l_sc[...] + jnp.sum(p, axis=-1, keepdims=True)
        pv = lax.dot_general(
            p.astype(v.dtype), v,
            dimension_numbers=(((2,), (1,)), ((0,), (0,))),
            preferred_element_type=jnp.float32)     # (hb, tq, d_k)
        acc_sc[...] = alpha[..., :1] * acc_sc[...] + pv
        m_sc[...] = m_new

    if mask_mode == "causal":
        # Skip KV tiles entirely above the diagonal (compute skipped; DMA not).
        pl.when(kvi * tkv <= qi * tq + (tq - 1))(update)
    else:
        update()

    @pl.when(kvi == pl.num_programs(3) - 1)
    def _():
        l = l_sc[...][..., :1]
        o_ref[0] = (acc_sc[...] / l).astype(o_ref.dtype)   # exact divide, once per q tile


def flash_attention(q_src, k_src, v_src, *, num_heads, q_head_off=0,
                    k_head_off=0, v_head_off=0, bias=None, mask_mode="none",
                    tq_target=256, tkv_target=512, head_block=None):
    B, _, Sq, d_k = q_src.shape
    Sk = k_src.shape[2]
    H = num_heads
    tq = _pick_tile(Sq, tq_target, 8)
    tkv = _pick_tile(Sk, tkv_target, 128)
    hb = H if head_block is None else head_block
    assert H % hb == 0
    assert q_head_off % hb == 0 and k_head_off % hb == 0 and v_head_off % hb == 0
    qob, kob, vob = q_head_off // hb, k_head_off // hb, v_head_off // hb
    grid = (B, H // hb, Sq // tq, Sk // tkv)

    in_specs = [
        pl.BlockSpec((1, hb, tq, d_k), lambda b, hi, qi, ki: (b, qob + hi, qi, 0)),
        pl.BlockSpec((1, hb, tkv, d_k), lambda b, hi, qi, ki: (b, kob + hi, ki, 0)),
        pl.BlockSpec((1, hb, tkv, d_k), lambda b, hi, qi, ki: (b, vob + hi, ki, 0)),
    ]
    args = [q_src, k_src, v_src]
    itm = q_src.dtype.itemsize
    block_bytes = (2 * hb * tq * d_k + 2 * hb * tkv * d_k) * itm
    if mask_mode == "dense":
        in_specs.append(pl.BlockSpec((tq, tkv), lambda b, hi, qi, ki: (qi, ki)))
        args.append(bias)
        block_bytes += tq * tkv * 4
    scratch_bytes = (2 * hb * tq * 128 + hb * tq * d_k) * 4

    return pl.pallas_call(
        functools.partial(_flash_attn_kernel, mask_mode=mask_mode),
        out_shape=jax.ShapeDtypeStruct((B, H, Sq, d_k), q_src.dtype),
        grid=grid,
        in_specs=in_specs,
        out_specs=pl.BlockSpec((1, hb, tq, d_k),
                               lambda b, hi, qi, ki: (b, hi, qi, 0)),
        scratch_shapes=[
            pltpu.VMEM((hb, tq, 128), jnp.float32),   # running max m (lane-replicated)
            pltpu.VMEM((hb, tq, 128), jnp.float32),   # running denom l
            pltpu.VMEM((hb, tq, d_k), jnp.float32),   # running numerator acc
        ],
        compiler_params=pltpu.CompilerParams(
            dimension_semantics=("parallel", "parallel", "parallel",
                                 "arbitrary"),
            vmem_limit_bytes=_vmem_limit(block_bytes, scratch_bytes),
        ),
    )(*args)


# ----------------------------------------------------------------------------
# Kernel 3: w_o projection fused with the head concat.
#   attn:(B, H, S, d_k) with w_o laid out per-head as (H, D, d_k)
#   -> out:(B, S, D), lane-dense last dim; head axis is the reduction axis.
# ----------------------------------------------------------------------------
def _merge_heads_proj_kernel(a_ref, w_ref, o_ref, acc_ref, *, hb):
    g = pl.program_id(3)

    @pl.when(g == 0)
    def _():
        acc_ref[...] = jnp.zeros_like(acc_ref)

    a = a_ref[0]                                    # (hb, tm, d_k)
    acc = acc_ref[...]
    for gg in range(hb):                            # static unrolled loop
        acc = acc + lax.dot_general(
            a[gg], w_ref[gg],                       # (tm, d_k) x (tn, d_k)
            dimension_numbers=(((1,), (1,)), ((), ())),
            preferred_element_type=jnp.float32,
        )
    acc_ref[...] = acc

    @pl.when(g == pl.num_programs(3) - 1)
    def _():
        o_ref[0] = acc.astype(o_ref.dtype)


def merge_heads_projection(attn, w_o_heads, *, tm_target=512, tn_target=512,
                           head_lane_target=512):
    B, H, S, d_k = attn.shape
    H2, D, d_k2 = w_o_heads.shape
    assert H2 == H and d_k2 == d_k
    tm = _pick_tile(S, tm_target, 8)
    tn = _pick_tile(D, tn_target, 128)
    hb = _pick_div(H, max(1, head_lane_target // d_k))
    grid = (B, S // tm, D // tn, H // hb)

    itm = attn.dtype.itemsize
    block_bytes = (hb * tm * d_k + hb * tn * d_k + tm * tn) * itm
    scratch_bytes = tm * tn * 4

    return pl.pallas_call(
        functools.partial(_merge_heads_proj_kernel, hb=hb),
        out_shape=jax.ShapeDtypeStruct((B, S, D), attn.dtype),
        grid=grid,
        in_specs=[
            pl.BlockSpec((1, hb, tm, d_k), lambda b, i, j, g: (b, g, i, 0)),
            pl.BlockSpec((hb, tn, d_k), lambda b, i, j, g: (g, j, 0)),
        ],
        out_specs=pl.BlockSpec((1, tm, tn), lambda b, i, j, g: (b, i, j)),
        scratch_shapes=[pltpu.VMEM((tm, tn), jnp.float32)],
        compiler_params=pltpu.CompilerParams(
            dimension_semantics=("parallel", "parallel", "parallel",
                                 "arbitrary"),
            vmem_limit_bytes=_vmem_limit(block_bytes, scratch_bytes),
        ),
    )(attn, w_o_heads)


# ----------------------------------------------------------------------------
# Full MultiHeadAttentionBlock forward
# ----------------------------------------------------------------------------
def _infer_mask_mode(mask, Sq, Sk):
    if mask is None:
        return "none"
    try:
        m = np.asarray(mask).reshape(Sq, Sk) != 0     # fails on tracers
    except Exception:
        return "dense"   # TODO(synk): pass mask_mode explicitly under jit
    if m.all():
        return "none"
    if Sq == Sk and np.array_equal(m, np.tril(np.ones((Sq, Sk), dtype=bool))):
        return "causal"
    return "dense"


def multi_head_attention_block(q, k, v, mask, params, h, *,
                               self_attention=None, kv_shared=None,
                               mask_mode=None):
    """q: (B, Sq, D), k/v: (B, Sk, D), mask: (1, 1, Sq, Sk) with 0 = masked
    (PyTorch masked_fill(mask == 0, -inf) semantics) or None.

    Pass self_attention / kv_shared / mask_mode explicitly when tracing under
    jit -- the object-identity / concrete-value fallbacks only work eagerly.
    """
    B, Sq, D = q.shape
    Sk = k.shape[1]
    d_k = D // h
    sm_scale = 1.0 / math.sqrt(d_k)

    if self_attention is None:
        self_attention = (q is k) and (k is v)
    if kv_shared is None:
        kv_shared = self_attention or (k is v)
    if mask_mode is None:
        mask_mode = _infer_mask_mode(mask, Sq, Sk)

    bias = None
    if mask_mode == "dense":
        mask2d = jnp.reshape(mask, (Sq, Sk))
        bias = jnp.where(mask2d == 0, jnp.float32(-1e30), jnp.float32(0.0))

    # Fold 1/sqrt(d_k) into w_q once (removes the per-KV-step q rescale).
    w_q = params["w_q"] * sm_scale
    w_k, w_v, w_o = params["w_k"], params["w_v"], params["w_o"]

    if self_attention:
        # Fused QKV: activation streamed from HBM once; result is head-major
        # (B, 3h, Sq, d_k) and flash reads q/k/v head slots without slicing.
        w_qkv = jnp.concatenate([w_q, w_k, w_v], axis=0).reshape(3 * h, d_k, D)
        qkv = project_to_heads(q, w_qkv)
        attn = flash_attention(qkv, qkv, qkv, num_heads=h,
                               q_head_off=0, k_head_off=h, v_head_off=2 * h,
                               bias=bias, mask_mode=mask_mode)
    elif kv_shared:
        # Cross-attention with a shared K/V source: fuse the K and V projections.
        q_heads = project_to_heads(q, w_q.reshape(h, d_k, D))
        w_kv = jnp.concatenate([w_k, w_v], axis=0).reshape(2 * h, d_k, D)
        kv = project_to_heads(k, w_kv)
        attn = flash_attention(q_heads, kv, kv, num_heads=h,
                               q_head_off=0, k_head_off=0, v_head_off=h,
                               bias=bias, mask_mode=mask_mode)
    else:
        q_heads = project_to_heads(q, w_q.reshape(h, d_k, D))
        k_heads = project_to_heads(k, w_k.reshape(h, d_k, D))
        v_heads = project_to_heads(v, w_v.reshape(h, d_k, D))
        attn = flash_attention(q_heads, k_heads, v_heads, num_heads=h,
                               bias=bias, mask_mode=mask_mode)

    # w_o per-head layout: w_o_heads[hh, n, dd] = w_o[n, hh * d_k + dd]
    # (one-time (D, D) weight rearrangement; negligible vs activation traffic).
    w_o_heads = w_o.reshape(D, h, d_k).transpose(1, 0, 2)
    return merge_heads_projection(attn, w_o_heads)


# ----------------------------------------------------------------------------
# Pure-JAX reference (full softmax) for correctness check
# ----------------------------------------------------------------------------
def reference(q, k, v, mask, params, h):
    B, Sq, D = q.shape
    Sk = k.shape[1]
    d_k = D // h

    def project(x, w, s_len):
        return (x @ w.T).reshape(B, s_len, h, d_k).transpose(0, 2, 1, 3)

    qh = project(q, params["w_q"], Sq)
    kh = project(k, params["w_k"], Sk)
    vh = project(v, params["w_v"], Sk)
    scores = jnp.einsum("bhqd,bhkd->bhqk", qh, kh) / math.sqrt(d_k)
    if mask is not None:
        scores = jnp.where(mask == 0, -1e30, scores)
    p = jax.nn.softmax(scores, axis=-1)
    x = jnp.einsum("bhqk,bhkd->bhqd", p, vh)
    x = x.transpose(0, 2, 1, 3).reshape(B, Sq, D)
    return x @ params["w_o"].T


if __name__ == "__main__":
    B, S, D, H = 2, 8, 32, 4   # batch, seq, d_model, heads -> d_k = 8

    key = jax.random.PRNGKey(0)
    kx, kk_, kv_, k1, k2, k3, k4 = jax.random.split(key, 7)

    x_in = jax.random.normal(kx, (B, S, D), dtype=jnp.float32)
    k_in = jax.random.normal(kk_, (B, S, D), dtype=jnp.float32)
    v_in = jax.random.normal(kv_, (B, S, D), dtype=jnp.float32)

    causal_mask = jnp.tril(jnp.ones((S, S), dtype=jnp.int32)).reshape(1, 1, S, S)
    full_mask = jnp.ones((1, 1, S, S), dtype=jnp.int32)
    pad_mask = jnp.concatenate(      # padding-style mask: last 3 keys masked
        [jnp.ones((S, S - 3), jnp.int32), jnp.zeros((S, 3), jnp.int32)],
        axis=-1).reshape(1, 1, S, S)

    # Deterministic parameters (PyTorch Linear weight layout: (out, in)).
    params = {
        "w_q": 0.02 * jax.random.normal(k1, (D, D), dtype=jnp.float32),
        "w_k": 0.02 * jax.random.normal(k2, (D, D), dtype=jnp.float32),
        "w_v": 0.02 * jax.random.normal(k3, (D, D), dtype=jnp.float32),
        "w_o": 0.02 * jax.random.normal(k4, (D, D), dtype=jnp.float32),
    }

    # 1) Self-attention + causal mask (auto-detected -> in-kernel iota bias,
    #    fully-masked KV-tile skip, fused QKV projection).
    out1 = jax.block_until_ready(
        multi_head_attention_block(x_in, x_in, x_in, causal_mask, params, H,
                                   self_attention=True))
    ref1 = reference(x_in, x_in, x_in, causal_mask, params, H)
    assert out1.shape == (B, S, D)
    assert jnp.allclose(out1, ref1, atol=1e-3, rtol=1e-3)

    # 2) Cross-attention with shared K/V source + all-ones mask
    #    (auto-detected "none" path, fused K/V projection).
    out2 = jax.block_until_ready(
        multi_head_attention_block(x_in, k_in, k_in, full_mask, params, H,
                                   self_attention=False))
    ref2 = reference(x_in, k_in, k_in, full_mask, params, H)
    assert jnp.allclose(out2, ref2, atol=1e-3, rtol=1e-3)

    # 3) Self-attention with an arbitrary (padding-style) dense mask.
    out3 = jax.block_until_ready(
        multi_head_attention_block(x_in, x_in, x_in, pad_mask, params, H,
                                   self_attention=True, mask_mode="dense"))
    ref3 = reference(x_in, x_in, x_in, pad_mask, params, H)
    assert jnp.allclose(out3, ref3, atol=1e-3, rtol=1e-3)

    # 4) Fully separate Q/K/V sources, no mask.
    out4 = jax.block_until_ready(
        multi_head_attention_block(x_in, k_in, v_in, None, params, H,
                                   self_attention=False, kv_shared=False))
    ref4 = reference(x_in, k_in, v_in, None, params, H)
    assert jnp.allclose(out4, ref4, atol=1e-3, rtol=1e-3)

    print("KERNEL_OK")
</pallas_src>

<mosaic_0001>
module attributes {stable_mosaic.version = 11 : i64} {
  func.func @_proj_heads_kernel(%arg0: i32, %arg1: i32, %arg2: i32, %arg3: i32, %arg4: memref<1x8x32xf32, #tpu.memory_space<vmem>>, %arg5: memref<12x8x32xf32, #tpu.memory_space<vmem>>, %arg6: memref<1x12x8x8xf32, #tpu.memory_space<vmem>>, %arg7: memref<12x8x8xf32, #tpu.memory_space<vmem>>) attributes {dimension_semantics = [#tpu.dimension_semantics<parallel>, #tpu.dimension_semantics<parallel>, #tpu.dimension_semantics<parallel>, #tpu.dimension_semantics<arbitrary>], iteration_bounds = array<i64: 2, 1, 1, 1>, scalar_prefetch = 0 : i64, scratch_operands = 1 : i64, tpu.core_type = #tpu.core_type<tc>, window_params = [{transform_indices = @transform_0, window_bounds = array<i64: 1, 8, 32>}, {transform_indices = @transform_1, window_bounds = array<i64: 12, 8, 32>}, {transform_indices = @transform_2, window_bounds = array<i64: 1, 12, 8, 8>}]} {
    %c0_i32 = arith.constant 0 : i32
    %0 = arith.cmpi eq, %arg3, %c0_i32 : i32
    %1 = arith.extui %0 : i1 to i32
    %c0_i32_0 = arith.constant 0 : i32
    %2 = arith.cmpi ne, %1, %c0_i32_0 : i32
    scf.if %2 {
      %cst_113 = arith.constant 0.000000e+00 : f32
      %116 = vector.broadcast %cst_113 : f32 to vector<12x8x8xf32>
      %c0_114 = arith.constant 0 : index
      %c0_115 = arith.constant 0 : index
      %c0_116 = arith.constant 0 : index
      %117 = vector.load %arg7[%c0_114, %c0_115, %c0_116] : memref<12x8x8xf32, #tpu.memory_space<vmem>>, vector<12x8x8xf32>
      tpu.vector_store %arg7[%c0_114, %c0_115, %c0_116], %116 {strides = array<i32>} : memref<12x8x8xf32, #tpu.memory_space<vmem>>, vector<12x8x8xf32>,
    } else {
    }
    %c0 = arith.constant 0 : index
    %c0_1 = arith.constant 0 : index
    %c0_2 = arith.constant 0 : index
    %3 = vector.load %arg4[%c0, %c0_1, %c0_2] : memref<1x8x32xf32, #tpu.memory_space<vmem>>, vector<1x8x32xf32>
    %4 = vector.shape_cast %3 : vector<1x8x32xf32> to vector<8x32xf32>
    %c0_3 = arith.constant 0 : index
    %c0_4 = arith.constant 0 : index
    %c0_5 = arith.constant 0 : index
    %5 = vector.load %arg7[%c0_3, %c0_4, %c0_5] : memref<12x8x8xf32, #tpu.memory_space<vmem>>, vector<1x8x8xf32>
    %6 = vector.shape_cast %5 : vector<1x8x8xf32> to vector<8x8xf32>
    %c0_6 = arith.constant 0 : index
    %c0_7 = arith.constant 0 : index
    %c0_8 = arith.constant 0 : index
    %7 = vector.load %arg5[%c0_6, %c0_7, %c0_8] : memref<12x8x32xf32, #tpu.memory_space<vmem>>, vector<1x8x32xf32>
    %8 = vector.shape_cast %7 : vector<1x8x32xf32> to vector<8x32xf32>
    %cst = arith.constant dense<0.000000e+00> : vector<8x8xf32>
    %9 = tpu.matmul %4, %8, %cst {dimension_numbers = #tpu.dot_dimension_numbers<[1], [1], [0], [0], [0, 0, 1, 0], [], []>} : vector<8x32xf32>, vector<8x32xf32>, vector<8x8xf32> -> vector<8x8xf32>
    %10 = arith.addf %6, %9 : vector<8x8xf32>
    %c0_9 = arith.constant 0 : index
    %c0_10 = arith.constant 0 : index
    %c0_11 = arith.constant 0 : index
    %11 = vector.load %arg7[%c0_9, %c0_10, %c0_11] : memref<12x8x8xf32, #tpu.memory_space<vmem>>, vector<1x8x8xf32>
    %12 = vector.shape_cast %11 : vector<1x8x8xf32> to vector<8x8xf32>
    %13 = vector.shape_cast %10 : vector<8x8xf32> to vector<1x8x8xf32>
    tpu.vector_store %arg7[%c0_9, %c0_10, %c0_11], %13 {strides = array<i32>} : memref<12x8x8xf32, #tpu.memory_space<vmem>>, vector<1x8x8xf32>,
    %c1 = arith.constant 1 : index
    %c0_12 = arith.constant 0 : index
    %c0_13 = arith.constant 0 : index
    %14 = vector.load %arg7[%c1, %c0_12, %c0_13] : memref<12x8x8xf32, #tpu.memory_space<vmem>>, vector<1x8x8xf32>
    %15 = vector.shape_cast %14 : vector<1x8x8xf32> to vector<8x8xf32>
    %c1_14 = arith.constant 1 : index
    %c0_15 = arith.constant 0 : index
    %c0_16 = arith.constant 0 : index
    %16 = vector.load %arg5[%c1_14, %c0_15, %c0_16] : memref<12x8x32xf32, #tpu.memory_space<vmem>>, vector<1x8x32xf32>
    %17 = vector.shape_cast %16 : vector<1x8x32xf32> to vector<8x32xf32>
    %cst_17 = arith.constant dense<0.000000e+00> : vector<8x8xf32>
    %18 = tpu.matmul %4, %17, %cst_17 {dimension_numbers = #tpu.dot_dimension_numbers<[1], [1], [0], [0], [0, 0, 1, 0], [], []>} : vector<8x32xf32>, vector<8x32xf32>, vector<8x8xf32> -> vector<8x8xf32>
    %19 = arith.addf %15, %18 : vector<8x8xf32>
    %c1_18 = arith.constant 1 : index
    %c0_19 = arith.constant 0 : index
    %c0_20 = arith.constant 0 : index
    %20 = vector.load %arg7[%c1_18, %c0_19, %c0_20] : memref<12x8x8xf32, #tpu.memory_space<vmem>>, vector<1x8x8xf32>
    %21 = vector.shape_cast %20 : vector<1x8x8xf32> to vector<8x8xf32>
    %22 = vector.shape_cast %19 : vector<8x8xf32> to vector<1x8x8xf32>
    tpu.vector_store %arg7[%c1_18, %c0_19, %c0_20], %22 {strides = array<i32>} : memref<12x8x8xf32, #tpu.memory_space<vmem>>, vector<1x8x8xf32>,
    %c2 = arith.constant 2 : index
    %c0_21 = arith.constant 0 : index
    %c0_22 = arith.constant 0 : index
    %23 = vector.load %arg7[%c2, %c0_21, %c0_22] : memref<12x8x8xf32, #tpu.memory_space<vmem>>, vector<1x8x8xf32>
    %24 = vector.shape_cast %23 : vector<1x8x8xf32> to vector<8x8xf32>
    %c2_23 = arith.constant 2 : index
    %c0_24 = arith.constant 0 : index
    %c0_25 = arith.constant 0 : index
    %25 = vector.load %arg5[%c2_23, %c0_24, %c0_25] : memref<12x8x32xf32, #tpu.memory_space<vmem>>, vector<1x8x32xf32>
    %26 = vector.shape_cast %25 : vector<1x8x32xf32> to vector<8x32xf32>
    %cst_26 = arith.constant dense<0.000000e+00> : vector<8x8xf32>
    %27 = tpu.matmul %4, %26, %cst_26 {dimension_numbers = #tpu.dot_dimension_numbers<[1], [1], [0], [0], [0, 0, 1, 0], [], []>} : vector<8x32xf32>, vector<8x32xf32>, vector<8x8xf32> -> vector<8x8xf32>
    %28 = arith.addf %24, %27 : vector<8x8xf32>
    %c2_27 = arith.constant 2 : index
    %c0_28 = arith.constant 0 : index
    %c0_29 = arith.constant 0 : index
    %29 = vector.load %arg7[%c2_27, %c0_28, %c0_29] : memref<12x8x8xf32, #tpu.memory_space<vmem>>, vector<1x8x8xf32>
    %30 = vector.shape_cast %29 : vector<1x8x8xf32> to vector<8x8xf32>
    %31 = vector.shape_cast %28 : vector<8x8xf32> to vector<1x8x8xf32>
    tpu.vector_store %arg7[%c2_27, %c0_28, %c0_29], %31 {strides = array<i32>} : memref<12x8x8xf32, #tpu.memory_space<vmem>>, vector<1x8x8xf32>,
    %c3 = arith.constant 3 : index
    %c0_30 = arith.constant 0 : index
    %c0_31 = arith.constant 0 : index
    %32 = vector.load %arg7[%c3, %c0_30, %c0_31] : memref<12x8x8xf32, #tpu.memory_space<vmem>>, vector<1x8x8xf32>
    %33 = vector.shape_cast %32 : vector<1x8x8xf32> to vector<8x8xf32>
    %c3_32 = arith.constant 3 : index
    %c0_33 = arith.constant 0 : index
    %c0_34 = arith.constant 0 : index
    %34 = vector.load %arg5[%c3_32, %c0_33, %c0_34] : memref<12x8x32xf32, #tpu.memory_space<vmem>>, vector<1x8x32xf32>
    %35 = vector.shape_cast %34 : vector<1x8x32xf32> to vector<8x32xf32>
    %cst_35 = arith.constant dense<0.000000e+00> : vector<8x8xf32>
    %36 = tpu.matmul %4, %35, %cst_35 {dimension_numbers = #tpu.dot_dimension_numbers<[1], [1], [0], [0], [0, 0, 1, 0], [], []>} : vector<8x32xf32>, vector<8x32xf32>, vector<8x8xf32> -> vector<8x8xf32>
    %37 = arith.addf %33, %36 : vector<8x8xf32>
    %c3_36 = arith.constant 3 : index
    %c0_37 = arith.constant 0 : index
    %c0_38 = arith.constant 0 : index
    %38 = vector.load %arg7[%c3_36, %c0_37, %c0_38] : memref<12x8x8xf32, #tpu.memory_space<vmem>>, vector<1x8x8xf32>
    %39 = vector.shape_cast %38 : vector<1x8x8xf32> to vector<8x8xf32>
    %40 = vector.shape_cast %37 : vector<8x8xf32> to vector<1x8x8xf32>
    tpu.vector_store %arg7[%c3_36, %c0_37, %c0_38], %40 {strides = array<i32>} : memref<12x8x8xf32, #tpu.memory_space<vmem>>, vector<1x8x8xf32>,
    %c4 = arith.constant 4 : index
    %c0_39 = arith.constant 0 : index
    %c0_40 = arith.constant 0 : index
    %41 = vector.load %arg7[%c4, %c0_39, %c0_40] : memref<12x8x8xf32, #tpu.memory_space<vmem>>, vector<1x8x8xf32>
    %42 = vector.shape_cast %41 : vector<1x8x8xf32> to vector<8x8xf32>
    %c4_41 = arith.constant 4 : index
    %c0_42 = arith.constant 0 : index
    %c0_43 = arith.constant 0 : index
    %43 = vector.load %arg5[%c4_41, %c0_42, %c0_43] : memref<12x8x32xf32, #tpu.memory_space<vmem>>, vector<1x8x32xf32>
    %44 = vector.shape_cast %43 : vector<1x8x32xf32> to vector<8x32xf32>
    %cst_44 = arith.constant dense<0.000000e+00> : vector<8x8xf32>
    %45 = tpu.matmul %4, %44, %cst_44 {dimension_numbers = #tpu.dot_dimension_numbers<[1], [1], [0], [0], [0, 0, 1, 0], [], []>} : vector<8x32xf32>, vector<8x32xf32>, vector<8x8xf32> -> vector<8x8xf32>
    %46 = arith.addf %42, %45 : vector<8x8xf32>
    %c4_45 = arith.constant 4 : index
    %c0_46 = arith.constant 0 : index
    %c0_47 = arith.constant 0 : index
    %47 = vector.load %arg7[%c4_45, %c0_46, %c0_47] : memref<12x8x8xf32, #tpu.memory_space<vmem>>, vector<1x8x8xf32>
    %48 = vector.shape_cast %47 : vector<1x8x8xf32> to vector<8x8xf32>
    %49 = vector.shape_cast %46 : vector<8x8xf32> to vector<1x8x8xf32>
    tpu.vector_store %arg7[%c4_45, %c0_46, %c0_47], %49 {strides = array<i32>} : memref<12x8x8xf32, #tpu.memory_space<vmem>>, vector<1x8x8xf32>,
    %c5 = arith.constant 5 : index
    %c0_48 = arith.constant 0 : index
    %c0_49 = arith.constant 0 : index
    %50 = vector.load %arg7[%c5, %c0_48, %c0_49] : memref<12x8x8xf32, #tpu.memory_space<vmem>>, vector<1x8x8xf32>
    %51 = vector.shape_cast %50 : vector<1x8x8xf32> to vector<8x8xf32>
    %c5_50 = arith.constant 5 : index
    %c0_51 = arith.constant 0 : index
    %c0_52 = arith.constant 0 : index
    %52 = vector.load %arg5[%c5_50, %c0_51, %c0_52] : memref<12x8x32xf32, #tpu.memory_space<vmem>>, vector<1x8x32xf32>
    %53 = vector.shape_cast %52 : vector<1x8x32xf32> to vector<8x32xf32>
    %cst_53 = arith.constant dense<0.000000e+00> : vector<8x8xf32>
    %54 = tpu.matmul %4, %53, %cst_53 {dimension_numbers = #tpu.dot_dimension_numbers<[1], [1], [0], [0], [0, 0, 1, 0], [], []>} : vector<8x32xf32>, vector<8x32xf32>, vector<8x8xf32> -> vector<8x8xf32>
    %55 = arith.addf %51, %54 : vector<8x8xf32>
    %c5_54 = arith.constant 5 : index
    %c0_55 = arith.constant 0 : index
    %c0_56 = arith.constant 0 : index
    %56 = vector.load %arg7[%c5_54, %c0_55, %c0_56] : memref<12x8x8xf32, #tpu.memory_space<vmem>>, vector<1x8x8xf32>
    %57 = vector.shape_cast %56 : vector<1x8x8xf32> to vector<8x8xf32>
    %58 = vector.shape_cast %55 : vector<8x8xf32> to vector<1x8x8xf32>
    tpu.vector_store %arg7[%c5_54, %c0_55, %c0_56], %58 {strides = array<i32>} : memref<12x8x8xf32, #tpu.memory_space<vmem>>, vector<1x8x8xf32>,
    %c6 = arith.constant 6 : index
    %c0_57 = arith.constant 0 : index
    %c0_58 = arith.constant 0 : index
    %59 = vector.load %arg7[%c6, %c0_57, %c0_58] : memref<12x8x8xf32, #tpu.memory_space<vmem>>, vector<1x8x8xf32>
    %60 = vector.shape_cast %59 : vector<1x8x8xf32> to vector<8x8xf32>
    %c6_59 = arith.constant 6 : index
    %c0_60 = arith.constant 0 : index
    %c0_61 = arith.constant 0 : index
    %61 = vector.load %arg5[%c6_59, %c0_60, %c0_61] : memref<12x8x32xf32, #tpu.memory_space<vmem>>, vector<1x8x32xf32>
    %62 = vector.shape_cast %61 : vector<1x8x32xf32> to vector<8x32xf32>
    %cst_62 = arith.constant dense<0.000000e+00> : vector<8x8xf32>
    %63 = tpu.matmul %4, %62, %cst_62 {dimension_numbers = #tpu.dot_dimension_numbers<[1], [1], [0], [0], [0, 0, 1, 0], [], []>} : vector<8x32xf32>, vector<8x32xf32>, vector<8x8xf32> -> vector<8x8xf32>
    %64 = arith.addf %60, %63 : vector<8x8xf32>
    %c6_63 = arith.constant 6 : index
    %c0_64 = arith.constant 0 : index
    %c0_65 = arith.constant 0 : index
    %65 = vector.load %arg7[%c6_63, %c0_64, %c0_65] : memref<12x8x8xf32, #tpu.memory_space<vmem>>, vector<1x8x8xf32>
    %66 = vector.shape_cast %65 : vector<1x8x8xf32> to vector<8x8xf32>
    %67 = vector.shape_cast %64 : vector<8x8xf32> to vector<1x8x8xf32>
    tpu.vector_store %arg7[%c6_63, %c0_64, %c0_65], %67 {strides = array<i32>} : memref<12x8x8xf32, #tpu.memory_space<vmem>>, vector<1x8x8xf32>,
    %c7 = arith.constant 7 : index
    %c0_66 = arith.constant 0 : index
    %c0_67 = arith.constant 0 : index
    %68 = vector.load %arg7[%c7, %c0_66, %c0_67] : memref<12x8x8xf32, #tpu.memory_space<vmem>>, vector<1x8x8xf32>
    %69 = vector.shape_cast %68 : vector<1x8x8xf32> to vector<8x8xf32>
    %c7_68 = arith.constant 7 : index
    %c0_69 = arith.constant 0 : index
    %c0_70 = arith.constant 0 : index
    %70 = vector.load %arg5[%c7_68, %c0_69, %c0_70] : memref<12x8x32xf32, #tpu.memory_space<vmem>>, vector<1x8x32xf32>
    %71 = vector.shape_cast %70 : vector<1x8x32xf32> to vector<8x32xf32>
    %cst_71 = arith.constant dense<0.000000e+00> : vector<8x8xf32>
    %72 = tpu.matmul %4, %71, %cst_71 {dimension_numbers = #tpu.dot_dimension_numbers<[1], [1], [0], [0], [0, 0, 1, 0], [], []>} : vector<8x32xf32>, vector<8x32xf32>, vector<8x8xf32> -> vector<8x8xf32>
    %73 = arith.addf %69, %72 : vector<8x8xf32>
    %c7_72 = arith.constant 7 : index
    %c0_73 = arith.constant 0 : index
    %c0_74 = arith.constant 0 : index
    %74 = vector.load %arg7[%c7_72, %c0_73, %c0_74] : memref<12x8x8xf32, #tpu.memory_space<vmem>>, vector<1x8x8xf32>
    %75 = vector.shape_cast %74 : vector<1x8x8xf32> to vector<8x8xf32>
    %76 = vector.shape_cast %73 : vector<8x8xf32> to vector<1x8x8xf32>
    tpu.vector_store %arg7[%c7_72, %c0_73, %c0_74], %76 {strides = array<i32>} : memref<12x8x8xf32, #tpu.memory_space<vmem>>, vector<1x8x8xf32>,
    %c8 = arith.constant 8 : index
    %c0_75 = arith.constant 0 : index
    %c0_76 = arith.constant 0 : index
    %77 = vector.load %arg7[%c8, %c0_75, %c0_76] : memref<12x8x8xf32, #tpu.memory_space<vmem>>, vector<1x8x8xf32>
    %78 = vector.shape_cast %77 : vector<1x8x8xf32> to vector<8x8xf32>
    %c8_77 = arith.constant 8 : index
    %c0_78 = arith.constant 0 : index
    %c0_79 = arith.constant 0 : index
    %79 = vector.load %arg5[%c8_77, %c0_78, %c0_79] : memref<12x8x32xf32, #tpu.memory_space<vmem>>, vector<1x8x32xf32>
    %80 = vector.shape_cast %79 : vector<1x8x32xf32> to vector<8x32xf32>
    %cst_80 = arith.constant dense<0.000000e+00> : vector<8x8xf32>
    %81 = tpu.matmul %4, %80, %cst_80 {dimension_numbers = #tpu.dot_dimension_numbers<[1], [1], [0], [0], [0, 0, 1, 0], [], []>} : vector<8x32xf32>, vector<8x32xf32>, vector<8x8xf32> -> vector<8x8xf32>
    %82 = arith.addf %78, %81 : vector<8x8xf32>
    %c8_81 = arith.constant 8 : index
    %c0_82 = arith.constant 0 : index
    %c0_83 = arith.constant 0 : index
    %83 = vector.load %arg7[%c8_81, %c0_82, %c0_83] : memref<12x8x8xf32, #tpu.memory_space<vmem>>, vector<1x8x8xf32>
    %84 = vector.shape_cast %83 : vector<1x8x8xf32> to vector<8x8xf32>
    %85 = vector.shape_cast %82 : vector<8x8xf32> to vector<1x8x8xf32>
    tpu.vector_store %arg7[%c8_81, %c0_82, %c0_83], %85 {strides = array<i32>} : memref<12x8x8xf32, #tpu.memory_space<vmem>>, vector<1x8x8xf32>,
    %c9 = arith.constant 9 : index
    %c0_84 = arith.constant 0 : index
    %c0_85 = arith.constant 0 : index
    %86 = vector.load %arg7[%c9, %c0_84, %c0_85] : memref<12x8x8xf32, #tpu.memory_space<vmem>>, vector<1x8x8xf32>
    %87 = vector.shape_cast %86 : vector<1x8x8xf32> to vector<8x8xf32>
    %c9_86 = arith.constant 9 : index
    %c0_87 = arith.constant 0 : index
    %c0_88 = arith.constant 0 : index
    %88 = vector.load %arg5[%c9_86, %c0_87, %c0_88] : memref<12x8x32xf32, #tpu.memory_space<vmem>>, vector<1x8x32xf32>
    %89 = vector.shape_cast %88 : vector<1x8x32xf32> to vector<8x32xf32>
    %cst_89 = arith.constant dense<0.000000e+00> : vector<8x8xf32>
    %90 = tpu.matmul %4, %89, %cst_89 {dimension_numbers = #tpu.dot_dimension_numbers<[1], [1], [0], [0], [0, 0, 1, 0], [], []>} : vector<8x32xf32>, vector<8x32xf32>, vector<8x8xf32> -> vector<8x8xf32>
    %91 = arith.addf %87, %90 : vector<8x8xf32>
    %c9_90 = arith.constant 9 : index
    %c0_91 = arith.constant 0 : index
    %c0_92 = arith.constant 0 : index
    %92 = vector.load %arg7[%c9_90, %c0_91, %c0_92] : memref<12x8x8xf32, #tpu.memory_space<vmem>>, vector<1x8x8xf32>
    %93 = vector.shape_cast %92 : vector<1x8x8xf32> to vector<8x8xf32>
    %94 = vector.shape_cast %91 : vector<8x8xf32> to vector<1x8x8xf32>
    tpu.vector_store %arg7[%c9_90, %c0_91, %c0_92], %94 {strides = array<i32>} : memref<12x8x8xf32, #tpu.memory_space<vmem>>, vector<1x8x8xf32>,
    %c10 = arith.constant 10 : index
    %c0_93 = arith.constant 0 : index
    %c0_94 = arith.constant 0 : index
    %95 = vector.load %arg7[%c10, %c0_93, %c0_94] : memref<12x8x8xf32, #tpu.memory_space<vmem>>, vector<1x8x8xf32>
    %96 = vector.shape_cast %95 : vector<1x8x8xf32> to vector<8x8xf32>
    %c10_95 = arith.constant 10 : index
    %c0_96 = arith.constant 0 : index
    %c0_97 = arith.constant 0 : index
    %97 = vector.load %arg5[%c10_95, %c0_96, %c0_97] : memref<12x8x32xf32, #tpu.memory_space<vmem>>, vector<1x8x32xf32>
    %98 = vector.shape_cast %97 : vector<1x8x32xf32> to vector<8x32xf32>
    %cst_98 = arith.constant dense<0.000000e+00> : vector<8x8xf32>
    %99 = tpu.matmul %4, %98, %cst_98 {dimension_numbers = #tpu.dot_dimension_numbers<[1], [1], [0], [0], [0, 0, 1, 0], [], []>} : vector<8x32xf32>, vector<8x32xf32>, vector<8x8xf32> -> vector<8x8xf32>
    %100 = arith.addf %96, %99 : vector<8x8xf32>
    %c10_99 = arith.constant 10 : index
    %c0_100 = arith.constant 0 : index
    %c0_101 = arith.constant 0 : index
    %101 = vector.load %arg7[%c10_99, %c0_100, %c0_101] : memref<12x8x8xf32, #tpu.memory_space<vmem>>, vector<1x8x8xf32>
    %102 = vector.shape_cast %101 : vector<1x8x8xf32> to vector<8x8xf32>
    %103 = vector.shape_cast %100 : vector<8x8xf32> to vector<1x8x8xf32>
    tpu.vector_store %arg7[%c10_99, %c0_100, %c0_101], %103 {strides = array<i32>} : memref<12x8x8xf32, #tpu.memory_space<vmem>>, vector<1x8x8xf32>,
    %c11 = arith.constant 11 : index
    %c0_102 = arith.constant 0 : index
    %c0_103 = arith.constant 0 : index
    %104 = vector.load %arg7[%c11, %c0_102, %c0_103] : memref<12x8x8xf32, #tpu.memory_space<vmem>>, vector<1x8x8xf32>
    %105 = vector.shape_cast %104 : vector<1x8x8xf32> to vector<8x8xf32>
    %c11_104 = arith.constant 11 : index
    %c0_105 = arith.constant 0 : index
    %c0_106 = arith.constant 0 : index
    %106 = vector.load %arg5[%c11_104, %c0_105, %c0_106] : memref<12x8x32xf32, #tpu.memory_space<vmem>>, vector<1x8x32xf32>
    %107 = vector.shape_cast %106 : vector<1x8x32xf32> to vector<8x32xf32>
    %cst_107 = arith.constant dense<0.000000e+00> : vector<8x8xf32>
    %108 = tpu.matmul %4, %107, %cst_107 {dimension_numbers = #tpu.dot_dimension_numbers<[1], [1], [0], [0], [0, 0, 1, 0], [], []>} : vector<8x32xf32>, vector<8x32xf32>, vector<8x8xf32> -> vector<8x8xf32>
    %109 = arith.addf %105, %108 : vector<8x8xf32>
    %c11_108 = arith.constant 11 : index
    %c0_109 = arith.constant 0 : index
    %c0_110 = arith.constant 0 : index
    %110 = vector.load %arg7[%c11_108, %c0_109, %c0_110] : memref<12x8x8xf32, #tpu.memory_space<vmem>>, vector<1x8x8xf32>
    %111 = vector.shape_cast %110 : vector<1x8x8xf32> to vector<8x8xf32>
    %112 = vector.shape_cast %109 : vector<8x8xf32> to vector<1x8x8xf32>
    tpu.vector_store %arg7[%c11_108, %c0_109, %c0_110], %112 {strides = array<i32>} : memref<12x8x8xf32, #tpu.memory_space<vmem>>, vector<1x8x8xf32>,
    %c0_i32_111 = arith.constant 0 : i32
    %113 = arith.cmpi eq, %arg3, %c0_i32_111 : i32
    %114 = arith.extui %113 : i1 to i32
    %c0_i32_112 = arith.constant 0 : i32
    %115 = arith.cmpi ne, %114, %c0_i32_112 : i32
    scf.if %115 {
      %c0_113 = arith.constant 0 : index
      %c0_114 = arith.constant 0 : index
      %c0_115 = arith.constant 0 : index
      %116 = vector.load %arg7[%c0_113, %c0_114, %c0_115] : memref<12x8x8xf32, #tpu.memory_space<vmem>>, vector<12x8x8xf32>
      %c0_116 = arith.constant 0 : index
      %c0_117 = arith.constant 0 : index
      %c0_118 = arith.constant 0 : index
      %c0_119 = arith.constant 0 : index
      %117 = vector.load %arg6[%c0_116, %c0_117, %c0_118, %c0_119] : memref<1x12x8x8xf32, #tpu.memory_space<vmem>>, vector<1x12x8x8xf32>
      %118 = vector.shape_cast %117 : vector<1x12x8x8xf32> to vector<12x8x8xf32>
      %119 = vector.shape_cast %116 : vector<12x8x8xf32> to vector<1x12x8x8xf32>
      tpu.vector_store %arg6[%c0_116, %c0_117, %c0_118, %c0_119], %119 {strides = array<i32>} : memref<1x12x8x8xf32, #tpu.memory_space<vmem>>, vector<1x12x8x8xf32>,
    } else {
    }
    return
  }
  func.func @transform_0(%arg0: i32, %arg1: i32, %arg2: i32, %arg3: i32) -> (i32, i32, i32) {
    %c0_i32 = arith.constant 0 : i32
    return %arg0, %arg1, %arg3 : i32, i32, i32
  }
  func.func @transform_1(%arg0: i32, %arg1: i32, %arg2: i32, %arg3: i32) -> (i32, i32, i32) {
    %c0_i32 = arith.constant 0 : i32
    %c0_i32_0 = arith.constant 0 : i32
    return %arg2, %c0_i32, %arg3 : i32, i32, i32
  }
  func.func @transform_2(%arg0: i32, %arg1: i32, %arg2: i32, %arg3: i32) -> (i32, i32, i32, i32) {
    %c0_i32 = arith.constant 0 : i32
    %c0_i32_0 = arith.constant 0 : i32
    return %arg0, %arg2, %arg1, %c0_i32 : i32, i32, i32, i32
  }
}

</mosaic_0001>

<bundles_post_ra>
// kernel: tpu_custom_call.1
= control target key start
LH: loop header
LB: loop body
LE: loop exit
PB: predicated region body
PF: predicated region fallthrough
CT: control target
= control target key end

     0   :  { %7 = vsyncpa [#allocation4], 0  ;;  %s1193_s0 = inlined_call_operand.hbm [shape: f32[2,8,32], index: 0, kind: input, shape index: {}]   ;;  %s1194_s1 = inlined_call_operand.hbm [shape: f32[12,8,32], index: 1, kind: input, shape index: {}]   ;;  %s1195_s2 = inlined_call_operand.vmem [shape: f32[2,12,8,8], index: 2, kind: output, shape index: {}]  }
   0x1   :  { %9 = vsyncpa [#allocation4 + $0x1], 0 }
   0x2   :  { %10 = vsyncpa [#allocation6], 0  ;;  %s1005_s9 = smov 0   ;;  %s1007_s10 = smov 0  }
   0x3   :  { %s1009_s11 = smov 0   ;;  %s1011_s12 = smov 0  }
   0x4   :  { %s1013_s13 = smov 0   ;;  %s1015_s14 = smov 0  }
   0x5 LB: > { %s763_s15 = sadd.s32 4294967295, %s984_s14   ;;  %p765_p0 = scmp.ge.s32.totalorder %s984_s14, 1  ;;  %s984_s14 = sphi %s1015_s14, %s16_s14   ;;  %s980_s13 = sphi %s1013_s13, %s1204_s13   ;;  %s976_s12 = sphi %s1011_s12, %s1203_s12   ;;  %s972_s11 = sphi %s1009_s11, %s1202_s11   ;;  %s968_s10 = sphi %s1007_s10, %s1201_s10   ;;  %s964_s9 = sphi %s1005_s9, %s1200_s9  }
   0x6   : > { %p1037_p1 = scmp.eq.s32.totalorder %s763_s15, 0  ;;  %p135_p2 = scmp.lt.s32.totalorder %s984_s14, 3 }
   0x7   : > { %s150_s19 = sshll.u32 %s1194_s1, 4  ;;  %s986_s21 = smov [#allocation5]   ;;  %s151_s19 = int_to_ptr.hbm [resolvable:$true] %s150_s19 }
   0x8   : > { %p1045_p3 = pnand %p765_p0, %p135_p2  ;;  %s152_s22 = sshll.u32 %s986_s21, 4  ;;  %s153_s22 = int_to_ptr.vmem [resolvable:$true] %s152_s22 }
   0x9   : > { %s987_s23 = smov 128   ;;  %s988_s24 = smov 8  }
   0xa   : > { %p807_p4 = pneg %p1045_p3  ;;  %s42_s25 = sadd.s32 1, %s980_s13 }
   0xb   : > { %p44_p6 = scmp.ge.s32.totalorder %s42_s25, 2  ;;  %p60_p7 = scmp.ne.s32.totalorder %s972_s11, %s968_s10 }
   0xc   : > { %p808_p5 = pnand %p807_p4, %p1037_p1  ;;  %p61_p8 = scmp.eq.s32.totalorder %s984_s14, 0 }
   0xd   : > { %s1206_s25 = smov (%p44_p6, %s42_s25), 0  ;;  %s53_s26 = sadd.s32 1, %s972_s11 }
   0xe   : > { %810 = dma.hbm_to_vmem [thread:$0]  (!%p808_p5), %s151_s19, 1536, %s153_s22, [#allocation6], %s987_s23, %s987_s23, %s988_s24  }
   0xf   : > { %p66_p9 = scmp.ne.s32.totalorder %s968_s10, %s964_s9  ;;  %s46_s27 = ssub.s32 %s980_s13, %s1206_s25 }
  0x10   : > { %p1064_p10 = por %p61_p8, %p60_p7  ;;  %p51_p11 = scmp.eq.s32.totalorder %s46_s27, 0 }
  0x11   : > { %p1070_p12 = por %p1037_p1, %p66_p9  ;;  %s166_s30 = sand.u32 1, %s972_s11  }
  0x12   : > { %s769_s3 = sshll.u32 %s980_s13, 3  ;;  %p816_p13 = scmp.lt.s32.totalorder %s984_s14, 2 }
  0x13   : > { %s1077_s4 = scalar_select %p51_p11, %s972_s11, %s53_s26  }
  0x14   : > { %s768_s5 = sshll.u32 %s166_s30, 3  ;;  %s176_s8 = scalar_lea.hbm %s1193_s0, %s769_s3 }
  0x15   : > { %s178_s9 = sshll.u32 %s176_s8, 4  ;;  %s170_s15 = scalar_lea.vmem [#allocation3], %s768_s5  ;;  %s179_s9 = int_to_ptr.hbm [resolvable:$true] %s178_s9 }
  0x16   : > { %s180_s17 = sshll.u32 %s170_s15, 4  ;;  %p812_p0 = pnand %p816_p13, %p1064_p10  ;;  %s181_s17 = int_to_ptr.vmem [resolvable:$true] %s180_s17 }
  0x17   : > { %s167_s18 = scalar_lea.sflag [#allocation4], %s166_s30  ;;  %189 = sbr.rel (%p1045_p3) target bundleno = 196 (0xc4), region = 28 }
  0x18   : > { %814 = dma.hbm_to_vmem [thread:$0]  (!%p812_p0), %s179_s9, 128, %s181_s17, %s167_s18  }
  0x19   : > { %s191_s19 = sand.u32 (!%p1045_p3), 1, %s968_s10  }
  0x1a   : > { %s771_s21 = sshll.u32 (!%p1045_p3), %s191_s19, 3  ;;  %s192_s22 = scalar_lea.sflag (!%p1045_p3), [#allocation4], %s191_s19 }
  0x1b   : > { %s195_s23 = scalar_lea.vmem (!%p1045_p3), [#allocation3], %s771_s21 }
  0x1c   : > { %955 = dma.done.wait (%p1070_p12), %s192_s22, 128  }
  0x1d   : > { %957 = vsyncadd (%p1070_p12), %s192_s22, 4294967168 }
  0x1e   : > { %959 = dma.done.wait (%p1037_p1), [#allocation6], 1536  }
  0x1f   : > { %961 = vsyncadd (%p1037_p1), [#allocation6], 4294965760  ;;  %vm247_vm0 = vcmask 64512   ;;  %v989_v0 = vmov 0.0   ;;  %vm263_vm1 = vcmask 261120   ;;  %v325_v1 = vld [vmem:[#allocation5 + $0x10] sm:$0xff] }
  0x20   : > { %248 = vst.msk [vmem:[#allocation2] sm:$0xff] %vm247_vm0, %v989_v0  ;;  %v354_v2 = vld [vmem:[#allocation5 + $0x18] sm:$0xff]  ;;  %778 = vmatpush.xpose.msk.msra.mxu2 %vm263_vm1, %v325_v1  ;;  %v441_v4 = vld [vmem:[#allocation5 + $0x30] sm:$0xff]  ;;  %v262_v6 = vld [vmem:[#allocation5] sm:$0xff]  ;;  %p231_p1 = scmp.lt.s32.totalorder %s976_s12, 1 }
  0x21   : > { %249 = vst.msk [vmem:[#allocation2 + $0x8] sm:$0xff] %vm247_vm0, %v989_v0  ;;  %v260_v3 = vld [vmem:[%s195_s23] sm:$0xff]  ;;  %780 = vmatpush.xpose.msk.msra.mxu3 %vm263_vm1, %v354_v2  ;;  %v296_v7 = vld [vmem:[#allocation5 + $0x8] sm:$0xff]  ;;  %v383_v8 = vld [vmem:[#allocation5 + $0x20] sm:$0xff]  ;;  %774 = vmatpush.xpose.msk.msra.mxu0 %vm263_vm1, %v262_v6 }
  0x22   : > { %250 = vst.msk [vmem:[#allocation2 + $0x10] sm:$0xff] %vm247_vm0, %v989_v0  ;;  %v470_v5 = vld [vmem:[#allocation5 + $0x38] sm:$0xff]  ;;  %v412_v9 = vld [vmem:[#allocation5 + $0x28] sm:$0xff]  ;;  %776 = vmatpush.xpose.msk.msra.mxu1 %vm263_vm1, %v296_v7  ;;  %v557_v10 = vld [vmem:[#allocation5 + $0x50] sm:$0xff]  ;;  %s1208_s12 = smov (!%p231_p1, %s976_s12), 1 }
  0x23   : > { %251 = vst.msk [vmem:[#allocation2 + $0x18] sm:$0xff] %vm247_vm0, %v989_v0  ;;  %779 = vmatmul.msk.f32.vlgmr.msra.gmra.mxu2 %vm263_vm1, %v260_v3  ;;  %v586_v11 = vld [vmem:[#allocation5 + $0x58] sm:$0xff]  ;;  %v499_v12 = vld [vmem:[#allocation5 + $0x40] sm:$0xff]  ;;  %v528_v13 = vld [vmem:[#allocation5 + $0x48] sm:$0xff]  ;;  %s800_s16 = smul.u32 96, %s1208_s12 }
  0x24   : > { %252 = vst.msk [vmem:[#allocation2 + $0x20] sm:$0xff] %vm247_vm0, %v989_v0  ;;  %786 = vmatpush.xpose.msk.msrb.mxu2 %vm263_vm1, %v441_v4  ;;  %781 = vmatmul.msk.f32.vlgmr.msra.gmra.mxu3 %vm263_vm1, %v260_v3 }
  0x25   : > { %253 = vst.msk [vmem:[#allocation2 + $0x28] sm:$0xff] %vm247_vm0, %v989_v0  ;;  %788 = vmatpush.xpose.msk.msrb.mxu3 %vm263_vm1, %v470_v5  ;;  %782 = vmatpush.xpose.msk.msrb.mxu0 %vm263_vm1, %v383_v8  ;;  %s1140_s26 = scalar_lea.vmem %s1195_s2, %s800_s16 }
  0x26   : > { %254 = vst.msk [vmem:[#allocation2 + $0x30] sm:$0xff] %vm247_vm0, %v989_v0  ;;  %784 = vmatpush.xpose.msk.msrb.mxu1 %vm263_vm1, %v412_v9  ;;  %775 = vmatmul.msk.f32.vlgmr.msra.gmra.mxu0 %vm263_vm1, %v260_v3 }
  0x27   : > { %255 = vst.msk [vmem:[#allocation2 + $0x38] sm:$0xff] %vm247_vm0, %v989_v0  ;;  %777 = vmatmul.msk.f32.vlgmr.msra.gmra.mxu1 %vm263_vm1, %v260_v3  ;;  %v261_v14 = vld [vmem:[#allocation2] sm:$0xff] }
  0x28   : > { %256 = vst.msk [vmem:[#allocation2 + $0x40] sm:$0xff] %vm247_vm0, %v989_v0  ;;  %794 = vmatpush.xpose.msk.msra.mxu2 %vm263_vm1, %v557_v10  ;;  %v294_v15 = vld [vmem:[#allocation2 + $0x8] sm:$0xff] }
  0x29   : > { %257 = vst.msk [vmem:[#allocation2 + $0x48] sm:$0xff] %vm247_vm0, %v989_v0  ;;  %796 = vmatpush.xpose.msk.msra.mxu3 %vm263_vm1, %v586_v11  ;;  %790 = vmatpush.xpose.msk.msra.mxu0 %vm263_vm1, %v499_v12  ;;  %v323_v20 = vld [vmem:[#allocation2 + $0x10] sm:$0xff] }
  0x2a   : > { %258 = vst.msk [vmem:[#allocation2 + $0x50] sm:$0xff] %vm247_vm0, %v989_v0  ;;  %792 = vmatpush.xpose.msk.msra.mxu1 %vm263_vm1, %v528_v13  ;;  %v352_v21 = vld [vmem:[#allocation2 + $0x18] sm:$0xff] }
  0x2b   : > { %259 = vst.msk [vmem:[#allocation2 + $0x58] sm:$0xff] %vm247_vm0, %v989_v0  ;;  %787 = vmatmul.msk.f32.vlgmr.msrb.gmra.mxu2 %vm263_vm1, %v260_v3  ;;  %v381_v26 = vld [vmem:[#allocation2 + $0x20] sm:$0xff] }
  0x2c   : > { %789 = vmatmul.msk.f32.vlgmr.msrb.gmra.mxu3 %vm263_vm1, %v260_v3  ;;  %v410_v27 = vld [vmem:[#allocation2 + $0x28] sm:$0xff] }
  0x2d   : > { %v439_v33 = vld [vmem:[#allocation2 + $0x30] sm:$0xff] }
  0x2e   : > { %783 = vmatmul.msk.f32.vlgmr.msrb.gmra.mxu0 %vm263_vm1, %v260_v3  ;;  %v468_v35 = vld [vmem:[#allocation2 + $0x38] sm:$0xff] }
  0x2f   : > { %785 = vmatmul.msk.f32.vlgmr.msrb.gmra.mxu1 %vm263_vm1, %v260_v3  ;;  %v497_v41 = vld [vmem:[#allocation2 + $0x40] sm:$0xff] }
  0x30   : > { %v526_v42 = vld [vmem:[#allocation2 + $0x48] sm:$0xff] }
  0x31   : > { %v555_v48 = vld [vmem:[#allocation2 + $0x50] sm:$0xff] }
  0x32   : > { %v584_v49 = vld [vmem:[#allocation2 + $0x58] sm:$0xff] }
  0x33   : > { %795 = vmatmul.msk.f32.vlgmr.msra.gmra.mxu2 %vm263_vm1, %v260_v3 }
  0x34   : > { %797 = vmatmul.msk.f32.vlgmr.msra.gmra.mxu3 %vm263_vm1, %v260_v3 }
  0x36   : > { %791 = vmatmul.msk.f32.vlgmr.msra.gmra.mxu0 %vm263_vm1, %v260_v3 }
  0x37   : > { %793 = vmatmul.msk.f32.vlgmr.msra.gmra.mxu1 %vm263_vm1, %v260_v3 }
  0xa3   : > { %v287_v16 = vpop.f32.mrf.mxu0 }
  0xa4   : > { %v317_v17 = vpop.f32.mrf.mxu1  ;;  %v290_v18 = vadd.f32 %v287_v16, %v261_v14 }
  0xa5   : > { %v320_v19 = vadd.f32 %v317_v17, %v294_v15 }
  0xa6   : > { %292 = vst.msk [vmem:[#allocation2] sm:$0xff] %vm247_vm0, %v290_v18  ;;  %v346_v22 = vpop.f32.mrf.mxu2 }
  0xa7   : > { %321 = vst.msk [vmem:[#allocation2 + $0x8] sm:$0xff] %vm247_vm0, %v320_v19  ;;  %v375_v23 = vpop.f32.mrf.mxu3  ;;  %v349_v24 = vadd.f32 %v346_v22, %v323_v20 }
  0xa8   : > { %v378_v25 = vadd.f32 %v375_v23, %v352_v21 }
  0xa9   : > { %350 = vst.msk [vmem:[#allocation2 + $0x10] sm:$0xff] %vm247_vm0, %v349_v24 }
  0xaa   : > { %379 = vst.msk [vmem:[#allocation2 + $0x18] sm:$0xff] %vm247_vm0, %v378_v25 }
  0xab   : > { %v404_v28 = vpop.f32.mrf.mxu0 }
  0xac   : > { %v433_v29 = vpop.f32.mrf.mxu1  ;;  %v407_v30 = vadd.f32 %v404_v28, %v381_v26 }
  0xad   : > { %v615_v31 = vld [vmem:[#allocation2] sm:$0xff]  ;;  %v436_v32 = vadd.f32 %v433_v29, %v410_v27 }
  0xae   : > { %627 = vst.msk [vmem:[%s1140_s26] sm:$0xff] %vm247_vm0, %v615_v31  ;;  %v616_v34 = vld [vmem:[#allocation2 + $0x8] sm:$0xff]  ;;  %v462_v36 = vpop.f32.mrf.mxu2 }
  0xaf   : > { %628 = vst.msk [vmem:[%s1140_s26 + $0x8] sm:$0xff] %vm247_vm0, %v616_v34  ;;  %v491_v37 = vpop.f32.mrf.mxu3  ;;  %v465_v38 = vadd.f32 %v462_v36, %v439_v33 }
  0xb0   : > { %408 = vst.msk [vmem:[#allocation2 + $0x20] sm:$0xff] %vm247_vm0, %v407_v30  ;;  %v617_v39 = vld [vmem:[#allocation2 + $0x10] sm:$0xff]  ;;  %v494_v40 = vadd.f32 %v491_v37, %v468_v35 }
  0xb1   : > { %437 = vst.msk [vmem:[#allocation2 + $0x28] sm:$0xff] %vm247_vm0, %v436_v32  ;;  %v618_v43 = vld [vmem:[#allocation2 + $0x18] sm:$0xff] }
  0xb2   : > { %629 = vst.msk [vmem:[%s1140_s26 + $0x10] sm:$0xff] %vm247_vm0, %v617_v39 }
  0xb3   : > { %630 = vst.msk [vmem:[%s1140_s26 + $0x18] sm:$0xff] %vm247_vm0, %v618_v43  ;;  %v520_v44 = vpop.f32.mrf.mxu0 }
  0xb4   : > { %v549_v45 = vpop.f32.mrf.mxu1  ;;  %466 = vst.msk [vmem:[#allocation2 + $0x30] sm:$0xff] %vm247_vm0, %v465_v38  ;;  %v523_v46 = vadd.f32 %v520_v44, %v497_v41 }
  0xb5   : > { %v552_v47 = vadd.f32 %v549_v45, %v526_v42  ;;  %495 = vst.msk [vmem:[#allocation2 + $0x38] sm:$0xff] %vm247_vm0, %v494_v40 }
  0xb6   : > { %524 = vst.msk [vmem:[#allocation2 + $0x40] sm:$0xff] %vm247_vm0, %v523_v46  ;;  %v578_v51 = vpop.f32.mrf.mxu2 }
  0xb7   : > { %v619_v50 = vld [vmem:[#allocation2 + $0x20] sm:$0xff]  ;;  %553 = vst.msk [vmem:[#allocation2 + $0x48] sm:$0xff] %vm247_vm0, %v552_v47  ;;  %v607_v52 = vpop.f32.mrf.mxu3  ;;  %v581_v54 = vadd.f32 %v578_v51, %v555_v48 }
  0xb8   : > { %631 = vst.msk [vmem:[%s1140_s26 + $0x20] sm:$0xff] %vm247_vm0, %v619_v50  ;;  %v620_v53 = vld [vmem:[#allocation2 + $0x28] sm:$0xff]  ;;  %v610_v55 = vadd.f32 %v607_v52, %v584_v49 }
  0xb9   : > { %632 = vst.msk [vmem:[%s1140_s26 + $0x28] sm:$0xff] %vm247_vm0, %v620_v53 }
  0xba   : > { %582 = vst.msk [vmem:[#allocation2 + $0x50] sm:$0xff] %vm247_vm0, %v581_v54 }
  0xbb   : > { %v621_v56 = vld [vmem:[#allocation2 + $0x30] sm:$0xff]  ;;  %611 = vst.msk [vmem:[#allocation2 + $0x58] sm:$0xff] %vm247_vm0, %v610_v55 }
  0xbc   : > { %633 = vst.msk [vmem:[%s1140_s26 + $0x30] sm:$0xff] %vm247_vm0, %v621_v56  ;;  %v622_v57 = vld [vmem:[#allocation2 + $0x38] sm:$0xff] }
  0xbd   : > { %634 = vst.msk [vmem:[%s1140_s26 + $0x38] sm:$0xff] %vm247_vm0, %v622_v57  ;;  %v623_v58 = vld [vmem:[#allocation2 + $0x40] sm:$0xff] }
  0xbe   : > { %635 = vst.msk [vmem:[%s1140_s26 + $0x40] sm:$0xff] %vm247_vm0, %v623_v58  ;;  %v624_v59 = vld [vmem:[#allocation2 + $0x48] sm:$0xff] }
  0xbf   : > { %636 = vst.msk [vmem:[%s1140_s26 + $0x48] sm:$0xff] %vm247_vm0, %v624_v59 }
  0xc1   : > { %v625_v60 = vld [vmem:[#allocation2 + $0x50] sm:$0xff] }
  0xc2   : > { %637 = vst.msk [vmem:[%s1140_s26 + $0x50] sm:$0xff] %vm247_vm0, %v625_v60  ;;  %v626_v61 = vld [vmem:[#allocation2 + $0x58] sm:$0xff] }
  0xc3   : > { %638 = vst.msk [vmem:[%s1140_s26 + $0x58] sm:$0xff] %vm247_vm0, %v626_v61 }
  0xc4 PF: > { %s16_s14 = sadd.s32 1, %s984_s14   ;;  %s1200_s9 = smov %s968_s10 }
  0xc5   : > { %p13_p2 = scmp.ge.s32.totalorder %s16_s14, 4   ;;  %s1201_s10 = smov %s972_s11 }
  0xc6   : > { %s1202_s11 = smov %s1077_s4  ;;  %s1203_s12 = smov %s980_s13 }
  0xc7   : > { %s1204_s13 = smov %s1206_s25  ;;  %15 = sbr.rel (!%p13_p2) target bundleno = 5 (0x5), region = 103 }
  0xcc   :  { %675 = vsyncpa [#allocation4], 1 }
  0xcd   :  { %677 = vsyncpa [#allocation4 + $0x1], 1 }
  0xce   :  { %678 = vsyncpa [#allocation6], 1 }

</bundles_post_ra>
